<compile_context>
chip_gen: v6e
topology: v6e:2x2x1
jax: 0.10.0
libtpu: 0.0.40
codegen_flags: <defaults>
</compile_context>

<pallas_src>
import math
import functools

import jax
import jax.numpy as jnp
from jax.experimental import pallas as pl
from jax.experimental.pallas import tpu as pltpu

BN_EPS = 1e-5


def _round_up(x: int, m: int) -> int:
    return (x + m - 1) // m * m


def _make_kernel(num_layers: int, in_dim: int, out_dim: int, fma_first: bool):
    """Fused MLP kernel: num_layers x (matmul + bias), ReLU between layers."""

    def kernel(x_ref, w_ref, b_ref, o_ref):
        b_all = b_ref[...]                     # (L, W) f32, BN shift folded in
        x = x_ref[...]                         # (tile_b, in_dim) bf16, unpadded K

        if fma_first:
            # Layer 0 on the VPU: K = in_dim is tiny, so an MXU pass would be ~97%
            # zeros and would force padding x's feature dim in HBM. A handful of
            # broadcast-FMAs over the 128-wide output is cheaper and keeps x lean.
            xf = x.astype(jnp.float32)
            w0 = w_ref[0]                      # (W, W) bf16, rows >= in_dim are zero
            h = xf[:, 0:1] * w0[0:1, :].astype(jnp.float32)
            for k in range(1, in_dim):
                h = h + xf[:, k:k + 1] * w0[k:k + 1, :].astype(jnp.float32)
            h = h + b_all[0]
        else:
            # Fallback for wider inputs: contract over the unpadded K directly.
            h = jnp.dot(x, w_ref[0][:in_dim, :],
                        preferred_element_type=jnp.float32) + b_all[0]

        if num_layers > 1:
            # ReLU; BatchNorm is folded into the next layer's W/b, Dropout = identity.
            h = jnp.maximum(h, 0.0)

        for l in range(1, num_layers):
            h = jnp.dot(h.astype(jnp.bfloat16), w_ref[l],
                        preferred_element_type=jnp.float32) + b_all[l]
            if l < num_layers - 1:
                h = jnp.maximum(h, 0.0)

        # Unpadded (masked) store of only the real output lanes.
        o_ref[...] = h[:, :out_dim]

    return kernel


def init_vibrationnet_params(key, input_size, hidden_sizes, output_size,
                             nontrivial_bn=True):
    """Parameters matching the PyTorch module layout.

    Linear: xavier_uniform_ weight (stored [in, out]), zero bias.
    BatchNorm1d: gamma/beta/running_mean/running_var. With nontrivial_bn=True the
    BN statistics are randomized (as if trained) so the BN-folding path is
    actually exercised by the correctness check."""
    params = []
    prev = input_size
    for h in hidden_sizes:
        key, wk, gk, bk, mk, vk = jax.random.split(key, 6)
        bound = math.sqrt(6.0 / (prev + h))
        w = jax.random.uniform(wk, (prev, h), jnp.float32, -bound, bound)
        b = jnp.zeros((h,), jnp.float32)
        if nontrivial_bn:
            gamma = jax.random.uniform(gk, (h,), jnp.float32, 0.5, 1.5)
            beta = 0.1 * jax.random.normal(bk, (h,), jnp.float32)
            rmean = 0.5 * jax.random.normal(mk, (h,), jnp.float32)
            rvar = jax.random.uniform(vk, (h,), jnp.float32, 0.5, 2.0)
        else:
            gamma = jnp.ones((h,), jnp.float32)
            beta = jnp.zeros((h,), jnp.float32)
            rmean = jnp.zeros((h,), jnp.float32)
            rvar = jnp.ones((h,), jnp.float32)
        params.extend([w, b, gamma, beta, rmean, rvar])
        prev = h
    key, wk = jax.random.split(key)
    bound = math.sqrt(6.0 / (prev + output_size))
    w_out = jax.random.uniform(wk, (prev, output_size), jnp.float32, -bound, bound)
    b_out = jnp.zeros((output_size,), jnp.float32)
    params.extend([w_out, b_out])
    return params


def _fold_batchnorm(params, num_hidden):
    """Fold each block's eval-mode BN affine into the NEXT Linear (exact)."""
    ws, bs = [], []
    scale, shift = None, None
    idx = 0
    for _ in range(num_hidden):
        w, b, gamma, beta, rmean, rvar = params[idx:idx + 6]
        idx += 6
        b = b.reshape(-1)
        gamma, beta, rmean, rvar = (t.reshape(-1) for t in (gamma, beta, rmean, rvar))
        if scale is not None:
            b = b + shift @ w                      # uses original w
            w = w * scale[:, None]
        ws.append(w)
        bs.append(b)
        s = gamma * jax.lax.rsqrt(rvar + BN_EPS)
        scale, shift = s, beta - rmean * s
    w_out, b_out = params[idx], params[idx + 1]
    b_out = b_out.reshape(-1)
    if scale is not None:
        b_out = b_out + shift @ w_out
        w_out = w_out * scale[:, None]
    ws.append(w_out)
    bs.append(b_out)
    return ws, bs


@functools.partial(jax.jit, static_argnames=("num_hidden", "output_size", "tile_b"))
def vibrationnet_forward(x, params, *, num_hidden, output_size, tile_b=4096):
    batch, input_size = x.shape
    num_layers = num_hidden + 1

    # 1) Fold eval-mode BatchNorm into the adjacent Linear weights/biases (exact).
    ws, bs = _fold_batchnorm(params, num_hidden)

    # 2) Stack all weights/biases into single lane-dense slabs (one resident DMA each).
    dims = [input_size] + [w.shape[1] for w in ws]
    W = max(_round_up(d, 128) for d in dims)       # uniform padded width (128 here)
    w_all = jnp.zeros((num_layers, W, W), jnp.float32)
    b_all = jnp.zeros((num_layers, W), jnp.float32)
    for l in range(num_layers):
        w_all = w_all.at[l, :ws[l].shape[0], :ws[l].shape[1]].set(ws[l])
        b_all = b_all.at[l, :bs[l].shape[0]].set(bs[l])
    w_all = w_all.astype(jnp.bfloat16)             # bf16 once, outside the kernel

    # 3) Batch tiling. x / out keep their UNPADDED feature dims in HBM (the kernel is
    #    memory-bound); large batch tiles; >= 2 grid steps when the batch allows it so
    #    both v7x TensorCores get work (no effect on single-TC v5e/v6e).
    batch8 = _round_up(batch, 8)
    eff_tile = min(tile_b, batch8)
    if batch8 >= 16 and eff_tile > batch8 // 2:
        eff_tile = _round_up(batch8 // 2, 8)
    eff_tile = max(8, _round_up(eff_tile, 8))

    w_bytes = w_all.size * 2
    b_bytes = b_all.size * 4
    VMEM_CAP = 40 << 20   # headroom under v7x's 64 MiB physical VMEM

    def _vmem_need(t):
        in_t = t * input_size * 2                  # bf16 x tile
        out_t = t * output_size * 4                # f32 out tile
        act_t = 4 * t * W * 4                      # live f32 activation temporaries
        return 2 * (in_t + out_t) + w_bytes + b_bytes + act_t

    while eff_tile > 8 and _vmem_need(eff_tile) > VMEM_CAP:
        eff_tile = max(8, (eff_tile // 2 + 7) // 8 * 8)

    batch_pad = _round_up(batch, eff_tile)
    grid = (batch_pad // eff_tile,)

    x_p = x.astype(jnp.bfloat16)                   # halves input DMA bytes
    if batch_pad != batch:
        x_p = jnp.pad(x_p, ((0, batch_pad - batch), (0, 0)))

    in_specs = [
        pl.BlockSpec((eff_tile, input_size), lambda i: (i, 0)),        # unpadded x
        pl.BlockSpec((num_layers, W, W), lambda i: (0, 0, 0)),         # resident weights
        pl.BlockSpec((num_layers, W), lambda i: (0, 0)),               # resident biases
    ]
    out_specs = pl.BlockSpec((eff_tile, output_size), lambda i: (i, 0))  # unpadded out

    flops = 2 * batch_pad * (input_size * W + (num_layers - 1) * W * W)
    bytes_accessed = (x_p.size * 2 + w_bytes + b_bytes
                      + batch_pad * output_size * 4)

    out = pl.pallas_call(
        _make_kernel(num_layers, input_size, output_size, input_size <= 64),
        out_shape=jax.ShapeDtypeStruct((batch_pad, output_size), jnp.float32),
        grid_spec=pltpu.PrefetchScalarGridSpec(
            num_scalar_prefetch=0,
            grid=grid,
            in_specs=in_specs,
            out_specs=out_specs,
        ),
        compiler_params=pltpu.CompilerParams(
            dimension_semantics=("parallel",),
            vmem_limit_bytes=int(min(VMEM_CAP,
                                     max(2 * _vmem_need(eff_tile), 16 << 20))),
        ),
        cost_estimate=pl.CostEstimate(
            flops=flops, transcendentals=0, bytes_accessed=bytes_accessed),
    )(x_p, w_all, b_all)

    return out[:batch] if batch_pad != batch else out


def _reference_forward(x, params, num_hidden):
    """Pure-JAX f32 reference (unfolded, unpadded) for correctness checking."""
    h = x
    idx = 0
    for _ in range(num_hidden):
        w, b, gamma, beta, rmean, rvar = params[idx:idx + 6]
        idx += 6
        h = h @ w + b
        h = jnp.maximum(h, 0.0)
        h = (h - rmean) / jnp.sqrt(rvar + BN_EPS) * gamma + beta
    w_out, b_out = params[idx], params[idx + 1]
    return h @ w_out + b_out


if __name__ == "__main__":
    # Small shapes consistent with the module's forward:
    #   x: [batch_size, input_size] -> y: [batch_size, output_size]
    batch_size = 8
    input_size = 4          # e.g. mass, damping ratio + 2 excitation stats
    hidden_sizes = [32, 32]
    output_size = 16        # displacement-response sequence length

    key = jax.random.PRNGKey(0)
    key, xkey = jax.random.split(key)
    x = jax.random.normal(xkey, (batch_size, input_size), jnp.float32)

    params = init_vibrationnet_params(key, input_size, hidden_sizes, output_size)

    y = vibrationnet_forward(
        x, params, num_hidden=len(hidden_sizes), output_size=output_size
    )
    y = jax.block_until_ready(y)

    y_ref = _reference_forward(x, params, len(hidden_sizes))
    assert y.shape == (batch_size, output_size)
    # bf16 weights + bf16 x on the MXU (f32 accumulation); BN folding is exact.
    assert jnp.allclose(y, y_ref, atol=3e-2, rtol=3e-2), "mismatch vs reference"

    print("KERNEL_OK")
</pallas_src>

<mosaic_0001>
module attributes {stable_mosaic.version = 11 : i64} {
  func.func @kernel(%arg0: i32, %arg1: memref<8x4xbf16, #tpu.memory_space<vmem>>, %arg2: memref<3x128x128xbf16, #tpu.memory_space<vmem>>, %arg3: memref<3x128xf32, #tpu.memory_space<vmem>>, %arg4: memref<8x16xf32, #tpu.memory_space<vmem>>) attributes {dimension_semantics = [#tpu.dimension_semantics<parallel>], iteration_bounds = array<i64: 1>, scalar_prefetch = 0 : i64, scratch_operands = 0 : i64, tpu.core_type = #tpu.core_type<tc>, window_params = [{transform_indices = @transform_0, window_bounds = array<i64: 8, 4>}, {pipeline_mode = #tpu.pipeline_mode<synchronous>, transform_indices = @transform_1, window_bounds = array<i64: 3, 128, 128>}, {pipeline_mode = #tpu.pipeline_mode<synchronous>, transform_indices = @transform_2, window_bounds = array<i64: 3, 128>}, {transform_indices = @transform_3, window_bounds = array<i64: 8, 16>}]} {
    %c0 = arith.constant 0 : index
    %c0_0 = arith.constant 0 : index
    %0 = vector.load %arg3[%c0, %c0_0] : memref<3x128xf32, #tpu.memory_space<vmem>>, vector<3x128xf32>
    %c0_1 = arith.constant 0 : index
    %c0_2 = arith.constant 0 : index
    %1 = vector.load %arg1[%c0_1, %c0_2] : memref<8x4xbf16, #tpu.memory_space<vmem>>, vector<8x4xbf16>
    %2 = arith.extf %1 : vector<8x4xbf16> to vector<8x4xf32>
    %c0_3 = arith.constant 0 : index
    %c0_4 = arith.constant 0 : index
    %c0_5 = arith.constant 0 : index
    %3 = vector.load %arg2[%c0_3, %c0_4, %c0_5] : memref<3x128x128xbf16, #tpu.memory_space<vmem>>, vector<1x128x128xbf16>
    %4 = vector.shape_cast %3 : vector<1x128x128xbf16> to vector<128x128xbf16>
    %5 = vector.extract_strided_slice %2 {offsets = [0, 0], sizes = [8, 1], strides = [1, 1]} : vector<8x4xf32> to vector<8x1xf32>
    %6 = vector.extract_strided_slice %4 {offsets = [0, 0], sizes = [1, 128], strides = [1, 1]} : vector<128x128xbf16> to vector<1x128xbf16>
    %7 = arith.extf %6 : vector<1x128xbf16> to vector<1x128xf32>
    %8 = vector.broadcast %5 : vector<8x1xf32> to vector<8x128xf32>
    %9 = vector.broadcast %7 : vector<1x128xf32> to vector<8x128xf32>
    %10 = arith.mulf %8, %9 : vector<8x128xf32>
    %11 = vector.extract_strided_slice %2 {offsets = [0, 1], sizes = [8, 1], strides = [1, 1]} : vector<8x4xf32> to vector<8x1xf32>
    %12 = vector.extract_strided_slice %4 {offsets = [1, 0], sizes = [1, 128], strides = [1, 1]} : vector<128x128xbf16> to vector<1x128xbf16>
    %13 = arith.extf %12 : vector<1x128xbf16> to vector<1x128xf32>
    %14 = vector.broadcast %11 : vector<8x1xf32> to vector<8x128xf32>
    %15 = vector.broadcast %13 : vector<1x128xf32> to vector<8x128xf32>
    %16 = arith.mulf %14, %15 : vector<8x128xf32>
    %17 = arith.addf %10, %16 : vector<8x128xf32>
    %18 = vector.extract_strided_slice %2 {offsets = [0, 2], sizes = [8, 1], strides = [1, 1]} : vector<8x4xf32> to vector<8x1xf32>
    %19 = vector.extract_strided_slice %4 {offsets = [2, 0], sizes = [1, 128], strides = [1, 1]} : vector<128x128xbf16> to vector<1x128xbf16>
    %20 = arith.extf %19 : vector<1x128xbf16> to vector<1x128xf32>
    %21 = vector.broadcast %18 : vector<8x1xf32> to vector<8x128xf32>
    %22 = vector.broadcast %20 : vector<1x128xf32> to vector<8x128xf32>
    %23 = arith.mulf %21, %22 : vector<8x128xf32>
    %24 = arith.addf %17, %23 : vector<8x128xf32>
    %25 = vector.extract_strided_slice %2 {offsets = [0, 3], sizes = [8, 1], strides = [1, 1]} : vector<8x4xf32> to vector<8x1xf32>
    %26 = vector.extract_strided_slice %4 {offsets = [3, 0], sizes = [1, 128], strides = [1, 1]} : vector<128x128xbf16> to vector<1x128xbf16>
    %27 = arith.extf %26 : vector<1x128xbf16> to vector<1x128xf32>
    %28 = vector.broadcast %25 : vector<8x1xf32> to vector<8x128xf32>
    %29 = vector.broadcast %27 : vector<1x128xf32> to vector<8x128xf32>
    %30 = arith.mulf %28, %29 : vector<8x128xf32>
    %31 = arith.addf %24, %30 : vector<8x128xf32>
    %32 = vector.extract_strided_slice %0 {offsets = [0, 0], sizes = [1, 128], strides = [1, 1]} : vector<3x128xf32> to vector<1x128xf32>
    %33 = vector.shape_cast %32 : vector<1x128xf32> to vector<128xf32>
    %34 = vector.shape_cast %33 : vector<128xf32> to vector<1x128xf32>
    %35 = vector.broadcast %34 : vector<1x128xf32> to vector<8x128xf32>
    %36 = arith.addf %31, %35 : vector<8x128xf32>
    %cst = arith.constant 0.000000e+00 : f32
    %37 = vector.broadcast %cst : f32 to vector<8x128xf32>
    %38 = arith.maximumf %36, %37 : vector<8x128xf32>
    %39 = arith.truncf %38 : vector<8x128xf32> to vector<8x128xbf16>
    %c1 = arith.constant 1 : index
    %c0_6 = arith.constant 0 : index
    %c0_7 = arith.constant 0 : index
    %40 = vector.load %arg2[%c1, %c0_6, %c0_7] : memref<3x128x128xbf16, #tpu.memory_space<vmem>>, vector<1x128x128xbf16>
    %41 = vector.shape_cast %40 : vector<1x128x128xbf16> to vector<128x128xbf16>
    %cst_8 = arith.constant dense<0.000000e+00> : vector<8x128xf32>
    %42 = tpu.matmul %39, %41, %cst_8 {dimension_numbers = #tpu.dot_dimension_numbers<[1], [0], [0], [1], [0, 0, 1, 1], [], []>} : vector<8x128xbf16>, vector<128x128xbf16>, vector<8x128xf32> -> vector<8x128xf32>
    %43 = vector.extract_strided_slice %0 {offsets = [1, 0], sizes = [1, 128], strides = [1, 1]} : vector<3x128xf32> to vector<1x128xf32>
    %44 = vector.shape_cast %43 : vector<1x128xf32> to vector<128xf32>
    %45 = vector.shape_cast %44 : vector<128xf32> to vector<1x128xf32>
    %46 = vector.broadcast %45 : vector<1x128xf32> to vector<8x128xf32>
    %47 = arith.addf %42, %46 : vector<8x128xf32>
    %cst_9 = arith.constant 0.000000e+00 : f32
    %48 = vector.broadcast %cst_9 : f32 to vector<8x128xf32>
    %49 = arith.maximumf %47, %48 : vector<8x128xf32>
    %50 = arith.truncf %49 : vector<8x128xf32> to vector<8x128xbf16>
    %c2 = arith.constant 2 : index
    %c0_10 = arith.constant 0 : index
    %c0_11 = arith.constant 0 : index
    %51 = vector.load %arg2[%c2, %c0_10, %c0_11] : memref<3x128x128xbf16, #tpu.memory_space<vmem>>, vector<1x128x128xbf16>
    %52 = vector.shape_cast %51 : vector<1x128x128xbf16> to vector<128x128xbf16>
    %cst_12 = arith.constant dense<0.000000e+00> : vector<8x128xf32>
    %53 = tpu.matmul %50, %52, %cst_12 {dimension_numbers = #tpu.dot_dimension_numbers<[1], [0], [0], [1], [0, 0, 1, 1], [], []>} : vector<8x128xbf16>, vector<128x128xbf16>, vector<8x128xf32> -> vector<8x128xf32>
    %54 = vector.extract_strided_slice %0 {offsets = [2, 0], sizes = [1, 128], strides = [1, 1]} : vector<3x128xf32> to vector<1x128xf32>
    %55 = vector.shape_cast %54 : vector<1x128xf32> to vector<128xf32>
    %56 = vector.shape_cast %55 : vector<128xf32> to vector<1x128xf32>
    %57 = vector.broadcast %56 : vector<1x128xf32> to vector<8x128xf32>
    %58 = arith.addf %53, %57 : vector<8x128xf32>
    %59 = vector.extract_strided_slice %58 {offsets = [0, 0], sizes = [8, 16], strides = [1, 1]} : vector<8x128xf32> to vector<8x16xf32>
    %c0_13 = arith.constant 0 : index
    %c0_14 = arith.constant 0 : index
    %60 = vector.load %arg4[%c0_13, %c0_14] : memref<8x16xf32, #tpu.memory_space<vmem>>, vector<8x16xf32>
    tpu.vector_store %arg4[%c0_13, %c0_14], %59 {strides = array<i32>} : memref<8x16xf32, #tpu.memory_space<vmem>>, vector<8x16xf32>,
    return
  }
  func.func @transform_0(%arg0: i32) -> (i32, i32) {
    %c0_i32 = arith.constant 0 : i32
    %c0_i32_0 = arith.constant 0 : i32
    return %arg0, %c0_i32 : i32, i32
  }
  func.func @transform_1(%arg0: i32) -> (i32, i32, i32) {
    %c0_i32 = arith.constant 0 : i32
    %c0_i32_0 = arith.constant 0 : i32
    %c0_i32_1 = arith.constant 0 : i32
    %c0_i32_2 = arith.constant 0 : i32
    return %c0_i32, %c0_i32_0, %c0_i32_1 : i32, i32, i32
  }
  func.func @transform_2(%arg0: i32) -> (i32, i32) {
    %c0_i32 = arith.constant 0 : i32
    %c0_i32_0 = arith.constant 0 : i32
    %c0_i32_1 = arith.constant 0 : i32
    return %c0_i32, %c0_i32_0 : i32, i32
  }
  func.func @transform_3(%arg0: i32) -> (i32, i32) {
    %c0_i32 = arith.constant 0 : i32
    %c0_i32_0 = arith.constant 0 : i32
    return %arg0, %c0_i32 : i32, i32
  }
}

</mosaic_0001>

<bundles_post_ra>
// kernel: vibrationnet_forward.1
= control target key start
LH: loop header
LB: loop body
LE: loop exit
PB: predicated region body
PF: predicated region fallthrough
CT: control target
= control target key end

     0   :  { %v460_v1 = vmov 0   ;;  %v461_v3 = vmov 2   ;;  %v462_v5 = vmov 0.0   ;;  %v463_v7 = vmov 1   ;;  %s565_s0 = inlined_call_operand.vmem [shape: bf16[8,4], index: 0, kind: input, shape index: {}]   ;;  %s566_s1 = inlined_call_operand.vmem [shape: bf16[3,128,128], index: 1, kind: input, shape index: {}]   ;;  %s567_s2 = inlined_call_operand.vmem [shape: f32[3,128], index: 2, kind: input, shape index: {}]   ;;  %s568_s3 = inlined_call_operand.hbm [shape: f32[8,16], index: 3, kind: output, shape index: {}]  }
   0x1   :  { %v17_v0 = vld [vmem:[%s565_s0] sm:$0xf]  ;;  %417 = vset.pattern.permute.xlu0 %v460_v1  ;;  %419 = vset.pattern.permute.xlu1 %v461_v3  ;;  %v422_v4 = vld [vmem:[%s566_s1 + $0x78] sm:$0xff]   ;;  %v423_v6 = vld [vmem:[%s566_s1 + $0x70] sm:$0xff]   ;;  %v464_v8 = vmov 3   ;;  %vm465_vm0 = vmmov 0  }
   0x2   :  { %v18_v2 = vunpack.c.l.bf16 %v17_v0  ;;  %370 = vmatprep.subr.bf16.mxu0 %v462_v5  ;;  %390 = vmatprep.subr.bf16.mxu1 %v462_v5  ;;  %v424_v9 = vld [vmem:[%s566_s1 + $0x68] sm:$0xff]   ;;  %v425_v10 = vld [vmem:[%s566_s1 + $0x60] sm:$0xff]  }
   0x3   :  { %371 = vmatpush3.bf16.msra.mxu0 %v422_v4  ;;  %386 = vmatprep.mubr.msk.bf16.mxu0 %vm465_vm0, %v462_v5 }
   0x4   :  { %23 = vperm.xlu0 %417, %v18_v2   ;;  %42 = vperm.xlu1 %419, %v18_v2  }
   0x5   :  { %372 = vmatprep.subr.bf16.mxu0 %v462_v5  ;;  %406 = vmatprep.mubr.msk.bf16.mxu1 %vm465_vm0, %v462_v5 }
   0x7   :  { %373 = vmatpush3.bf16.msra.mxu0 %v423_v6 }
   0x8   :  { %418 = vset.pattern.permute.xlu0 %v463_v7  ;;  %420 = vset.pattern.permute.xlu1 %v464_v8 }
   0x9   :  { %32 = vperm.xlu0 %418, %v18_v2   ;;  %52 = vperm.xlu1 %420, %v18_v2  }
   0xa   :  { %374 = vmatprep.subr.bf16.mxu0 %v462_v5 }
   0xb   :  { %375 = vmatpush3.bf16.msra.mxu0 %v424_v9 }
   0xc   :  { %376 = vmatprep.subr.bf16.mxu0 %v462_v5 }
   0xd   :  { %421 = vset.pattern.permute.xlu0 %v464_v8 }
   0xe   :  { %8 = vsyncpa [#allocation3], 0  ;;  %v426_v11 = vld [vmem:[%s566_s1 + $0x58] sm:$0xff]   ;;  %v431_v13 = vld [vmem:[%s566_s1 + $0xb0] sm:$0xff]   ;;  %v26_v21 = vlaneseq  ;;  %vm288_vm1 = vcmask 130048  }
   0xf   :  { %377 = vmatpush3.bf16.msra.mxu0 %v425_v10  ;;  %v430_v12 = vld [vmem:[%s566_s1 + $0xb8] sm:$0xff]   ;;  %v427_v14 = vld [vmem:[%s566_s1 + $0x50] sm:$0xff]   ;;  %v432_v15 = vld [vmem:[%s566_s1 + $0xa8] sm:$0xff]  }
  0x10   :  { %378 = vmatprep.subr.bf16.mxu0 %v462_v5  ;;  %391 = vmatpush3.bf16.msra.mxu1 %v430_v12  ;;  %v428_v16 = vld [vmem:[%s566_s1 + $0x48] sm:$0xff]   ;;  %v433_v17 = vld [vmem:[%s566_s1 + $0xa0] sm:$0xff]   ;;  %v434_v19 = vld [vmem:[%s566_s1 + $0x98] sm:$0xff]   ;;  %v27_v22 = vshrl.u32 %v26_v21, 7 }
  0x11   :  { %392 = vmatprep.subr.bf16.mxu1 %v462_v5  ;;  %v429_v18 = vld [vmem:[%s566_s1 + $0x40] sm:$0xff]   ;;  %v435_v20 = vld [vmem:[%s566_s1 + $0x90] sm:$0xff]   ;;  %v436_v49 = vld [vmem:[%s566_s1 + $0x88] sm:$0xff]  }
  0x12   :  { %v19_v23 = vld [vmem:[%s566_s1] sm:$0xf]  ;;  %v28_v25 = vsub.s32 0, %v27_v22  ;;  %v37_v26 = vsub.s32 1, %v27_v22  ;;  %v47_v28 = vsub.s32 2, %v27_v22  ;;  %v57_v30 = vsub.s32 3, %v27_v22 }
  0x13   :  { %379 = vmatpush3.bf16.msra.mxu0 %v426_v11  ;;  %v20_v24 = vunpack.c.l.bf16 %v19_v23  ;;  %v16_v39 = vld [vmem:[%s567_s2] sm:$0x7]  ;;  %s466_s2 = smov [#allocation2]  }
  0x14   :  { %380 = vmatprep.subr.bf16.mxu0 %v462_v5  ;;  %393 = vmatpush3.bf16.msra.mxu1 %v431_v13  ;;  %v64_v44 = vrot.slane %v16_v39, %v28_v25  ;;  %v437_v50 = vld [vmem:[%s566_s1 + $0x80] sm:$0xff]   ;;  %v88_v51 = vrot.slane %v16_v39, %v37_v26  ;;  %v199_v59 = vrot.slane %v16_v39, %v47_v28  ;;  %s296_s21 = sshll.u32 %s466_s2, 4  ;;  %s297_s21 = int_to_ptr.vmem [resolvable:$true] %s296_s21 }
  0x15   :  { %394 = vmatprep.subr.bf16.mxu1 %v462_v5  ;;  %v29_v31 = vrot.slane %v20_v24, %v28_v25  ;;  %v38_v32 = vrot.slane %v20_v24, %v37_v26  ;;  %v48_v33 = vrot.slane %v20_v24, %v47_v28  ;;  %v58_v34 = vrot.slane %v20_v24, %v57_v30  ;;  %s438_s1 = scalar_lea.vmem %s297_s21, 128  ;;  %p443_p1 = scmp.lt.s32.totalorder %s297_s21, %s297_s21 }
  0x16   :  { %p439_p0 = scmp.ne.s32.totalorder %s297_s21, %s438_s1  ;;  %p444_p2 = scmp.lt.s32.totalorder %s438_s1, %s438_s1 }
  0x17   :  { %381 = vmatpush3.bf16.msra.mxu0 %v427_v14 }
  0x18   :  { %382 = vmatprep.subr.bf16.mxu0 %v462_v5  ;;  %395 = vmatpush3.bf16.msra.mxu1 %v432_v15  ;;  %p445_p3 = por %p444_p2, %p443_p1 }
  0x19   :  { %396 = vmatprep.subr.bf16.mxu1 %v462_v5 }
  0x1a   :  { %p446_p4 = pnand %p445_p3, %p439_p0 }
  0x1b   :  { %383 = vmatpush3.bf16.msra.mxu0 %v428_v16 }
  0x1c   :  { %384 = vmatprep.subr.bf16.mxu0 %v462_v5  ;;  %397 = vmatpush3.bf16.msra.mxu1 %v433_v17 }
  0x1d   :  { %398 = vmatprep.subr.bf16.mxu1 %v462_v5 }
  0x1f   :  { %385 = vmatpush3.bf16.msra.mxu0 %v429_v18 }
  0x20   :  { %399 = vmatpush3.bf16.msra.mxu1 %v434_v19 }
  0x21   :  { %400 = vmatprep.subr.bf16.mxu1 %v462_v5 }
  0x24   :  { %401 = vmatpush3.bf16.msra.mxu1 %v435_v20 }
  0x25   :  { %402 = vmatprep.subr.bf16.mxu1 %v462_v5 }
  0x28   :  { %403 = vmatpush3.bf16.msra.mxu1 %v436_v49 }
  0x29   :  { %404 = vmatprep.subr.bf16.mxu1 %v462_v5 }
  0x2c   :  { %405 = vmatpush3.bf16.msra.mxu1 %v437_v50 }
  0x7f   :  { %v24_v27 = vpop.permute.xlu0 %23  ;;  %v43_v29 = vpop.permute.xlu1 %42 }
  0x80   :  { %v30_v37 = vmul.f32 %v29_v31, %v24_v27  ;;  %v49_v40 = vmul.f32 %v48_v33, %v43_v29 }
  0x84   :  { %v33_v35 = vpop.permute.xlu0 %32  ;;  %v53_v36 = vpop.permute.xlu1 %52 }
  0x85   :  { %v39_v38 = vmul.f32 %v38_v32, %v33_v35  ;;  %v59_v42 = vmul.f32 %v58_v34, %v53_v36 }
  0x87   :  { %v40_v41 = vadd.f32 %v39_v38, %v30_v37 }
  0x89   :  { %v50_v43 = vadd.f32 %v49_v40, %v40_v41 }
  0x8b   :  { %v60_v45 = vadd.f32 %v59_v42, %v50_v43 }
  0x8d   :  { %v65_v46 = vadd.f32 %v64_v44, %v60_v45 }
  0x8f   :  { %v66_v47 = vmax.f32 %v65_v46, 0.0 }
  0x91   :  { %v67_v48 = vpack.c.bf16 %v66_v47, %v66_v47 }
  0x93   :  { %387 = vmatmul.mubr.bf16.vlgmr.msra.gmra.mxu0 %v67_v48 }
 0x153   :  { %v171_v52 = vpop.f32.mrf.mxu0 }
 0x154   :  { %v172_v53 = vadd.f32 %v171_v52, %v88_v51 }
 0x155   :  { %v388_v54 = vpop.f32.mrf.mxu0 }
 0x156   :  { %v177_v55 = vmax.f32 %v172_v53, 0.0 }
 0x157   :  { %v174_v56 = vpop.f32.mrf.mxu0 }
 0x158   :  { %v178_v57 = vpack.c.bf16 %v177_v55, %v177_v55 }
 0x159   :  { %v389_v58 = vpop.f32.mrf.mxu0 }
 0x15a   :  { %407 = vmatmul.mubr.bf16.vlgmr.msra.gmra.mxu1 %v178_v57 }
 0x21a   :  { %v282_v60 = vpop.f32.mrf.mxu1 }
 0x21b   :  { %v283_v61 = vadd.f32 %v282_v60, %v199_v59 }
 0x21c   :  { %v408_v62 = vpop.f32.mrf.mxu1 }
 0x21d   :  { %289 = vst.msk [vmem:[#allocation2] sm:$0xff] %vm288_vm1, %v283_v61 }
 0x21e   :  { %v285_v63 = vpop.f32.mrf.mxu1 }
 0x21f   :  { %449 = shalt.err (!%p446_p4)
}
 0x220   :  { %299 = dma.vmem_to_hbm [thread:$0]  %s297_s21, 128, %s568_s3, [#allocation3]   ;;  %v409_v0 = vpop.f32.mrf.mxu1 }
 0x221   :  { %458 = dma.done.wait [#allocation3], 128  }
 0x222   :  { %459 = vsyncadd [#allocation3], 4294967168 }
 0x223   :  { %303 = vsyncpa [#allocation3], 1 }

</bundles_post_ra>
